<compile_context>
chip_gen: v5e
topology: v5e:2x2
jax: 0.10.0
libtpu: 0.0.40
codegen_flags: <defaults>
</compile_context>

<pallas_src>
from typing import NamedTuple

import jax
import jax.numpy as jnp
from jax.experimental import pallas as pl
from jax.experimental.pallas import tpu as pltpu


# ----------------------------- helpers --------------------------------------


def _round_up(x, m):
    return ((x + m - 1) // m) * m


def _vmem_cap_bytes():
    try:
        cap = pltpu.get_tpu_info().vmem_capacity_bytes
        return int(cap * 3 // 4)          # ~96 MiB on v5e/v6e, ~48 MiB on v7x
    except Exception:
        return 48 << 20                   # safe cap for every generation


def _plan_k(K, tk):
    """Pick the K tile so x / W need no K padding whenever possible."""
    if K <= tk:
        return K, K                       # single full-K block, no padding
    t = (tk // 128) * 128
    while t >= 128:                       # largest multiple of 128 <= tk dividing K
        if K % t == 0:
            return t, K
        t -= 128
    tk_e = min(tk, _round_up(K, 128))     # ragged large K: pad (rare for IA3)
    return tk_e, _round_up(K, tk_e)


def _plan_n(N, tn):
    """Pick the N tile; keep the j-grid >= 2 when N allows (v7x has 2 TCs)."""
    n0 = _round_up(N, 128)
    tn_e = min(tn, n0)
    if n0 >= 256 and n0 // tn_e < 2:
        tn_e = max(128, _round_up((n0 + 1) // 2, 128))
    return tn_e, _round_up(N, tn_e)


def _w_block_spec(tk_e, tn_e, index_map, deep):
    """Weight BlockSpec, optionally with 3-deep pipelining."""
    if deep and hasattr(pl, "Buffered"):
        try:
            return pl.BlockSpec((tk_e, tn_e), index_map,
                                pipeline_mode=pl.Buffered(3))
        except TypeError:                 # older Pallas without pipeline_mode
            pass
    return pl.BlockSpec((tk_e, tn_e), index_map)


# ----------------------------- kernels --------------------------------------


def _ia3_kernel_single_k(x_ref, w_ref, b_ref, s_ref, o_ref):
    # Whole K reduction in one MXU call; fuse bias + IA3 scale on the VPU.
    acc = jnp.dot(x_ref[...], w_ref[...], preferred_element_type=jnp.float32)
    o_ref[...] = (acc + b_ref[...]) * s_ref[...]


def _ia3_kernel_multi_k(x_ref, w_ref, b_ref, s_ref, o_ref):
    # Output block is VMEM-resident across the (innermost) K axis: accumulate
    # directly into o_ref (f32), no scratch needed.
    @pl.when(pl.program_id(2) == 0)
    def _():
        o_ref[...] = jnp.zeros_like(o_ref)

    o_ref[...] += jnp.dot(x_ref[...], w_ref[...],
                          preferred_element_type=jnp.float32)

    @pl.when(pl.program_id(2) == pl.num_programs(2) - 1)
    def _():
        o_ref[...] = (o_ref[...] + b_ref[...]) * s_ref[...]


# ------------------------ parameter preparation -----------------------------


class IA3Params(NamedTuple):
    wt: jax.Array          # [k_pad, n_pad] weight, already transposed (+bf16)
    b2: jax.Array          # [1, n_pad] f32 bias
    s2: jax.Array          # [1, n_pad] f32 IA3 scale
    n_out: int
    k_in: int
    k_pad: int
    n_pad: int
    tk: int
    tn: int
    use_bf16: bool


def prepare_ia3_params(w, b, scale, *, use_bf16=True, tn=1024, tk=1024):
    """One-time (load-time) packing of the nn.Linear weight + IA3 scale.

    w:     [N, K]  (PyTorch nn.Linear weight layout)
    b:     [N] or None
    scale: [N], [1] or scalar (IA3Module falls back to a scalar scale)
    """
    w = jnp.asarray(w)
    N, K = w.shape
    if b is None:
        b = jnp.zeros((N,), jnp.float32)
    b = jnp.asarray(b, jnp.float32).reshape(-1)
    scale = jnp.asarray(scale, jnp.float32).reshape(-1)
    if scale.shape[0] == 1 and N != 1:
        scale = jnp.broadcast_to(scale, (N,))

    tk_e, k_pad = _plan_k(K, tk)
    tn_e, n_pad = _plan_n(N, tn)

    wt = w.T                                        # [K, N], one-time relayout
    if use_bf16:
        wt = wt.astype(jnp.bfloat16)
    if (k_pad, n_pad) != (K, N):
        wt = jnp.pad(wt, ((0, k_pad - K), (0, n_pad - N)))
    if n_pad != N:
        b = jnp.pad(b, (0, n_pad - N))
        scale = jnp.pad(scale, (0, n_pad - N))

    return IA3Params(wt=wt, b2=b.reshape(1, n_pad), s2=scale.reshape(1, n_pad),
                     n_out=N, k_in=K, k_pad=k_pad, n_pad=n_pad,
                     tk=tk_e, tn=tn_e, use_bf16=use_bf16)


# ------------------------------ forward -------------------------------------


def ia3_apply(params, x, *, tm=512, w_buffer_count=3, vmem_limit_bytes=None):
    """out = (x @ W^T + b) * scale, fused in a single Pallas TPU kernel."""
    x = jnp.asarray(x)
    lead = x.shape[:-1]
    K = x.shape[-1]
    assert K == params.k_in, (K, params.k_in)
    x2d = x.reshape(-1, K)
    M = x2d.shape[0]

    m_align = 16 if params.use_bf16 else 8
    tm_e = _round_up(min(tm, _round_up(M, m_align)), m_align)
    m_pad = _round_up(M, tm_e)

    xp = x2d.astype(jnp.bfloat16) if params.use_bf16 else x2d
    if m_pad != M or params.k_pad != K:
        xp = jnp.pad(xp, ((0, m_pad - M), (0, params.k_pad - K)))

    tk_e, tn_e = params.tk, params.tn
    grid_i = m_pad // tm_e
    grid_j = params.n_pad // tn_e
    grid_k = params.k_pad // tk_e

    deep = (w_buffer_count > 2) and (grid_i * grid_j * grid_k >= w_buffer_count)
    in_bytes = 2 if params.use_bf16 else 4
    w_bufs = w_buffer_count if deep else 2
    if vmem_limit_bytes is None:
        live = (2 * tm_e * tk_e * in_bytes          # x blocks (double buffered)
                + w_bufs * tk_e * tn_e * in_bytes   # W^T blocks
                + 2 * tm_e * tn_e * 4               # f32 output blocks
                + 4 * tn_e * 4)                     # bias + scale blocks
        vmem_limit_bytes = int(min(max(2 * live, 32 << 20), _vmem_cap_bytes()))

    if grid_k == 1:
        grid = (grid_i, grid_j)
        kernel = _ia3_kernel_single_k
        semantics = ("parallel", "parallel")
        x_map = lambda i, j: (i, 0)
        w_map = lambda i, j: (0, j)
        v_map = lambda i, j: (0, j)
        o_map = lambda i, j: (i, j)
    else:
        grid = (grid_i, grid_j, grid_k)
        kernel = _ia3_kernel_multi_k
        semantics = ("parallel", "parallel", "arbitrary")
        x_map = lambda i, j, k: (i, k)
        w_map = lambda i, j, k: (k, j)
        v_map = lambda i, j, k: (0, j)
        o_map = lambda i, j, k: (i, j)

    def _run(use_deep):
        in_specs = [
            pl.BlockSpec((tm_e, tk_e), x_map),
            _w_block_spec(tk_e, tn_e, w_map, use_deep),
            pl.BlockSpec((1, tn_e), v_map),
            pl.BlockSpec((1, tn_e), v_map),
        ]
        return pl.pallas_call(
            kernel,
            out_shape=jax.ShapeDtypeStruct((m_pad, params.n_pad), jnp.float32),
            grid=grid,
            in_specs=in_specs,
            out_specs=pl.BlockSpec((tm_e, tn_e), o_map),
            compiler_params=pltpu.CompilerParams(
                dimension_semantics=semantics,
                vmem_limit_bytes=vmem_limit_bytes),
        )(xp, params.wt, params.b2, params.s2)

    if deep:
        try:
            out = _run(True)
        except Exception:        # fallback if Buffered(3) is unsupported here
            out = _run(False)
    else:
        out = _run(False)

    if m_pad != M or params.n_pad != params.n_out:
        out = out[:M, :params.n_out]
    return out.reshape(*lead, params.n_out)


def ia3_linear(x, w, b, scale, *, use_bf16=True, tm=512, tn=1024, tk=1024):
    """Convenience one-shot wrapper.  For repeated calls, hoist
    prepare_ia3_params() out of the hot path and reuse the result."""
    params = prepare_ia3_params(w, b, scale, use_bf16=use_bf16, tn=tn, tk=tk)
    return ia3_apply(params, x, tm=tm)


def _reference(x, w, b, scale):
    return (jnp.dot(x, w.T, precision=jax.lax.Precision.HIGHEST) + b) * scale


# -------------------------------- demo --------------------------------------


if __name__ == "__main__":
    key = jax.random.PRNGKey(0)

    # ---- Test 1: f32 path, shapes implied by the module (nn.Linear(32,128)),
    # ---- IA3 scale initialized to ones exactly like the PyTorch __init__.
    batch, in_features, out_features = 8, 32, 128
    kx, kw, kb = jax.random.split(key, 3)
    x = jax.random.normal(kx, (batch, in_features), dtype=jnp.float32)
    w = jax.random.normal(kw, (out_features, in_features), dtype=jnp.float32) * 0.05
    b = jax.random.normal(kb, (out_features,), dtype=jnp.float32) * 0.01
    scale = jnp.ones((out_features,), dtype=jnp.float32)

    params1 = prepare_ia3_params(w, b, scale, use_bf16=False)   # load-time prep
    out1 = ia3_apply(params1, x)
    jax.block_until_ready(out1)
    ref1 = _reference(x, w, b, scale)
    assert out1.shape == (batch, out_features)
    assert jnp.allclose(out1, ref1, atol=1e-4, rtol=1e-4), "test 1 mismatch"

    # ---- Test 1b: leading batch dims (nn.Linear semantics on [..., K]).
    x3d = jax.random.normal(kx, (2, 4, in_features), dtype=jnp.float32)
    out1b = ia3_apply(params1, x3d)
    jax.block_until_ready(out1b)
    ref1b = _reference(x3d.reshape(-1, in_features), w, b, scale).reshape(2, 4, -1)
    assert out1b.shape == (2, 4, out_features)
    assert jnp.allclose(out1b, ref1b, atol=1e-4, rtol=1e-4), "test 1b mismatch"

    # ---- Test 2: default bf16 weight-streaming path, ragged shapes, learned
    # ---- scale; exercises full-K blocks (no x padding in K) and the j>=2 split.
    M2, K2, N2 = 72, 300, 260
    k1, k2, k3, k4 = jax.random.split(jax.random.PRNGKey(0), 4)
    x2 = jax.random.normal(k1, (M2, K2), dtype=jnp.float32)
    w2 = jax.random.normal(k2, (N2, K2), dtype=jnp.float32) * 0.05
    b2 = jax.random.normal(k3, (N2,), dtype=jnp.float32) * 0.01
    s2 = 1.0 + 0.1 * jax.random.normal(k4, (N2,), dtype=jnp.float32)

    params2 = prepare_ia3_params(w2, b2, s2)                     # bf16 default
    out2 = ia3_apply(params2, x2)
    jax.block_until_ready(out2)
    ref2 = _reference(x2, w2, b2, s2)
    assert out2.shape == (M2, N2)
    assert jnp.allclose(out2, ref2, atol=3e-2, rtol=3e-2), "test 2 mismatch"

    # ---- Test 3: multi-K grid (K-axis accumulation into the resident output
    # ---- block) + deep weight buffering on the K-blocked path.
    M3, K3, N3 = 16, 512, 256
    q1, q2, q3, q4 = jax.random.split(jax.random.PRNGKey(1), 4)
    x3 = jax.random.normal(q1, (M3, K3), dtype=jnp.float32)
    w3 = jax.random.normal(q2, (N3, K3), dtype=jnp.float32) * 0.05
    b3 = jax.random.normal(q3, (N3,), dtype=jnp.float32) * 0.01
    s3 = 1.0 + 0.1 * jax.random.normal(q4, (N3,), dtype=jnp.float32)

    params3 = prepare_ia3_params(w3, b3, s3, use_bf16=True, tn=128, tk=128)
    out3 = ia3_apply(params3, x3, tm=16)
    jax.block_until_ready(out3)
    ref3 = _reference(x3, w3, b3, s3)
    assert out3.shape == (M3, N3)
    assert jnp.allclose(out3, ref3, atol=3e-2, rtol=3e-2), "test 3 mismatch"

    print("KERNEL_OK")
</pallas_src>

<mosaic_0001>
module attributes {stable_mosaic.version = 11 : i64} {
  func.func @_ia3_kernel_single_k(%arg0: i32, %arg1: i32, %arg2: memref<8x32xf32, #tpu.memory_space<vmem>>, %arg3: memref<32x128xf32, #tpu.memory_space<vmem>>, %arg4: memref<1x128xf32, #tpu.memory_space<vmem>>, %arg5: memref<1x128xf32, #tpu.memory_space<vmem>>, %arg6: memref<8x128xf32, #tpu.memory_space<vmem>>) attributes {dimension_semantics = [#tpu.dimension_semantics<parallel>, #tpu.dimension_semantics<parallel>], iteration_bounds = array<i64: 1, 1>, scalar_prefetch = 0 : i64, scratch_operands = 0 : i64, tpu.core_type = #tpu.core_type<tc>, window_params = [{transform_indices = @transform_0, window_bounds = array<i64: 8, 32>}, {transform_indices = @transform_1, window_bounds = array<i64: 32, 128>}, {transform_indices = @transform_2, window_bounds = array<i64: 1, 128>}, {transform_indices = @transform_3, window_bounds = array<i64: 1, 128>}, {transform_indices = @transform_4, window_bounds = array<i64: 8, 128>}]} {
    %c0 = arith.constant 0 : index
    %c0_0 = arith.constant 0 : index
    %0 = vector.load %arg2[%c0, %c0_0] : memref<8x32xf32, #tpu.memory_space<vmem>>, vector<8x32xf32>
    %c0_1 = arith.constant 0 : index
    %c0_2 = arith.constant 0 : index
    %1 = vector.load %arg3[%c0_1, %c0_2] : memref<32x128xf32, #tpu.memory_space<vmem>>, vector<32x128xf32>
    %cst = arith.constant dense<0.000000e+00> : vector<8x128xf32>
    %2 = tpu.matmul %0, %1, %cst {dimension_numbers = #tpu.dot_dimension_numbers<[1], [0], [0], [1], [0, 0, 1, 1], [], []>} : vector<8x32xf32>, vector<32x128xf32>, vector<8x128xf32> -> vector<8x128xf32>
    %c0_3 = arith.constant 0 : index
    %c0_4 = arith.constant 0 : index
    %3 = vector.load %arg4[%c0_3, %c0_4] : memref<1x128xf32, #tpu.memory_space<vmem>>, vector<1x128xf32>
    %4 = vector.broadcast %3 : vector<1x128xf32> to vector<8x128xf32>
    %5 = arith.addf %2, %4 : vector<8x128xf32>
    %c0_5 = arith.constant 0 : index
    %c0_6 = arith.constant 0 : index
    %6 = vector.load %arg5[%c0_5, %c0_6] : memref<1x128xf32, #tpu.memory_space<vmem>>, vector<1x128xf32>
    %7 = vector.broadcast %6 : vector<1x128xf32> to vector<8x128xf32>
    %8 = arith.mulf %5, %7 : vector<8x128xf32>
    %c0_7 = arith.constant 0 : index
    %c0_8 = arith.constant 0 : index
    %9 = vector.load %arg6[%c0_7, %c0_8] : memref<8x128xf32, #tpu.memory_space<vmem>>, vector<8x128xf32>
    tpu.vector_store %arg6[%c0_7, %c0_8], %8 {strides = array<i32>} : memref<8x128xf32, #tpu.memory_space<vmem>>, vector<8x128xf32>,
    return
  }
  func.func @transform_0(%arg0: i32, %arg1: i32) -> (i32, i32) {
    %c0_i32 = arith.constant 0 : i32
    %c0_i32_0 = arith.constant 0 : i32
    return %arg0, %c0_i32 : i32, i32
  }
  func.func @transform_1(%arg0: i32, %arg1: i32) -> (i32, i32) {
    %c0_i32 = arith.constant 0 : i32
    %c0_i32_0 = arith.constant 0 : i32
    return %c0_i32, %arg1 : i32, i32
  }
  func.func @transform_2(%arg0: i32, %arg1: i32) -> (i32, i32) {
    %c0_i32 = arith.constant 0 : i32
    %c0_i32_0 = arith.constant 0 : i32
    return %c0_i32, %arg1 : i32, i32
  }
  func.func @transform_3(%arg0: i32, %arg1: i32) -> (i32, i32) {
    %c0_i32 = arith.constant 0 : i32
    %c0_i32_0 = arith.constant 0 : i32
    return %c0_i32, %arg1 : i32, i32
  }
  func.func @transform_4(%arg0: i32, %arg1: i32) -> (i32, i32) {
    %c0_i32 = arith.constant 0 : i32
    return %arg0, %arg1 : i32, i32
  }
}

</mosaic_0001>

<bundles_post_ra>
// kernel: tpu_custom_call.1
= control target key start
LH: loop header
LB: loop body
LE: loop exit
PB: predicated region body
PF: predicated region fallthrough
CT: control target
= control target key end

     0   :  { %9 = vsyncpa [#allocation3], 0  ;;  %s236_s0 = inlined_call_operand.hbm [shape: f32[8,32], index: 0, kind: input, shape index: {}]   ;;  %s237_s1 = inlined_call_operand.hbm [shape: f32[32,128], index: 1, kind: input, shape index: {}]   ;;  %s238_s2 = inlined_call_operand.vmem [shape: f32[1,128], index: 2, kind: input, shape index: {}]   ;;  %s239_s3 = inlined_call_operand.vmem [shape: f32[1,128], index: 3, kind: input, shape index: {}]   ;;  %s240_s4 = inlined_call_operand.hbm [shape: f32[8,128], index: 4, kind: output, shape index: {}]  }
   0x1   :  { %10 = vsyncpa [#allocation6], 0 }
   0x2   :  { %11 = vsyncpa [#allocation4], 0  ;;  %s17_s17 = sshll.u32 %s236_s0, 4  ;;  %s191_s18 = smov [#allocation2]   ;;  %s18_s17 = int_to_ptr.hbm [resolvable:$true] %s17_s17 }
   0x3   :  { %s19_s19 = sshll.u32 %s191_s18, 4  ;;  %s27_s22 = sshll.u32 %s237_s1, 4  ;;  %s20_s19 = int_to_ptr.vmem [resolvable:$true] %s19_s19  ;;  %s28_s22 = int_to_ptr.hbm [resolvable:$true] %s27_s22 }
   0x4   :  { %22 = dma.hbm_to_vmem [thread:$0]  %s18_s17, 128, %s20_s19, [#allocation3]  }
   0x5   :  { %s192_s23 = smov [#allocation5]   ;;  %s193_s25 = smov 128  }
   0x6   :  { %s29_s24 = sshll.u32 %s192_s23, 4  ;;  %s194_s26 = smov 8   ;;  %s30_s24 = int_to_ptr.vmem [resolvable:$true] %s29_s24 }
   0x7   :  { %35 = dma.hbm_to_vmem [thread:$0]  %s28_s22, 512, %s30_s24, [#allocation6], %s193_s25, %s193_s25, %s194_s26  }
   0x8   :  { %185 = dma.done.wait [#allocation3], 128  }
   0x9   :  { %186 = vsyncadd [#allocation3], 4294967168 }
   0xa   :  { %187 = dma.done.wait [#allocation6], 512  }
   0xb   :  { %188 = vsyncadd [#allocation6], 4294966784  ;;  %v52_v0 = vld [vmem:[#allocation5 + $0x18] sm:$0xff]  ;;  %v51_v1 = vld [vmem:[#allocation5 + $0x10] sm:$0xff]  ;;  %vm57_vm0 = vcmask 261120   ;;  %s195_s29 = smov [#allocation7]  }
   0xc   :  { %73 = vmatpush.msra.mxu0 %v52_v0  ;;  %v50_v2 = vld [vmem:[#allocation5 + $0x8] sm:$0xff]  ;;  %v49_v3 = vld [vmem:[#allocation5] sm:$0xff]  ;;  %v48_v4 = vld [vmem:[#allocation2] sm:$0xff]  ;;  %s92_s30 = sshll.u32 %s195_s29, 4  ;;  %s94_s7 = sshll.u32 %s240_s4, 4  ;;  %s93_s30 = int_to_ptr.vmem [resolvable:$true] %s92_s30  ;;  %s95_s7 = int_to_ptr.hbm [resolvable:$true] %s94_s7 }
   0xd   :  { %v111_v5 = vld [vmem:[%s238_s2] ss:$0 sm:$0xff] }
   0xe   :  { %74 = vmatpush.msra.mxu0 %v51_v1  ;;  %v112_v6 = vld [vmem:[%s239_s3] ss:$0 sm:$0xff] }
  0x10   :  { %75 = vmatpush.msra.mxu0 %v50_v2 }
  0x12   :  { %76 = vmatpush.msra.mxu0 %v49_v3 }
  0x13   :  { %105 = vmatmul.msk.f32.vlgmr.msra.gmra.mxu0 %vm57_vm0, %v48_v4 }
  0x90   :  { %v78_v7 = vpop.f32.mrf.mxu0 }
  0x91   :  { %v79_v8 = vadd.f32 %v111_v5, %v78_v7 }
  0x93   :  { %v85_v9 = vmul.f32 %v112_v6, %v79_v8 }
  0x95   :  { %86 = vst [vmem:[#allocation7] sm:$0xff] %v85_v9 }
  0x96   :  { %97 = dma.vmem_to_hbm [thread:$0]  %s93_s30, 128, %s95_s7, [#allocation4]  }
  0x97   :  { %189 = dma.done.wait [#allocation4], 128  }
  0x98   :  { %190 = vsyncadd [#allocation4], 4294967168 }
  0x99   :  { %102 = vsyncpa [#allocation3], 1 }
  0x9a   :  { %103 = vsyncpa [#allocation6], 1 }
  0x9b   :  { %104 = vsyncpa [#allocation4], 1 }

</bundles_post_ra>
